<compile_context>
chip_gen: v7x
topology: tpu7x:2x2x1
jax: 0.10.0
libtpu: 0.0.40
codegen_flags: <defaults>
</compile_context>

<pallas_src>
import functools

import jax
import jax.numpy as jnp
from jax.experimental import pallas as pl
from jax.experimental.pallas import tpu as pltpu


def _mix32(x):
    """splitmix/murmur-style 32-bit avalanche, computed in int32 (wrapping)."""
    x = x ^ jax.lax.shift_right_logical(x, jnp.int32(16))
    x = x * jnp.int32(-2048144789)      # 0x85ebca6b
    x = x ^ jax.lax.shift_right_logical(x, jnp.int32(13))
    x = x * jnp.int32(-1028477387)      # 0xc2b2ae35
    x = x ^ jax.lax.shift_right_logical(x, jnp.int32(16))
    return x


def _dropout_linear_kernel(p, training, seed_ref, x_ref, w_ref, b_ref, o_ref):
    """Fused Linear(H->H) + Dropout(p) kernel for one (tm, H) row tile.

    seed_ref : SMEM scalar-prefetch ref, int32[1]   (PRNG seed)
    x_ref    : VMEM (tm, H)  activations tile
    w_ref    : VMEM (H, H)   weight (resident across grid steps; y = x @ W)
    b_ref    : VMEM (1, H)   bias   (resident)
    o_ref    : VMEM (tm, H)  output tile
    """
    y = jnp.dot(x_ref[...], w_ref[...], preferred_element_type=jnp.float32)
    y = y + b_ref[...]

    if training and p > 0.0:
        blk_m, H = o_ref.shape
        i = pl.program_id(0)
        row = jax.lax.broadcasted_iota(jnp.int32, (blk_m, H), 0)
        col = jax.lax.broadcasted_iota(jnp.int32, (blk_m, H), 1)
        # Global element id (program_id folded in via the global row offset),
        # mixed with the seed -> independent mask per tile, no repeats.
        gid = (i * jnp.int32(blk_m) + row) * jnp.int32(H) + col
        h = _mix32(gid ^ (seed_ref[0] * jnp.int32(-1640531527)))   # 0x9e3779b9
        r = h & jnp.int32(0x7FFFFFFF)                  # uniform in [0, 2^31)
        threshold = jnp.int32(min(int(p * (1 << 31)), (1 << 31) - 1))
        keep = r >= threshold                          # P(keep) = 1 - p
        scale = jnp.float32(1.0 / (1.0 - p))
        y = jnp.where(keep, y * scale, jnp.zeros_like(y))

    o_ref[...] = y.astype(o_ref.dtype)


def dropout_layer_forward(x, w, b, seed, *, p=0.0, training=True, block_m=512):
    """Pallas equivalent of DropoutLayer(module=Linear(H,H), p=p).forward(x).

    x : (B, S, H) float32
    w : (H, H)    float32   (y = x @ w)
    b : (H,)      float32
    seed : int PRNG seed for the dropout mask
    """
    B, S, H = x.shape
    M = B * S
    x2d = x.reshape(M, H)
    b2d = b.reshape(1, H)
    seed_arr = jnp.asarray([seed], dtype=jnp.int32)

    # Tile the row dimension so the pipeline double-buffers x/out DMAs.
    tm = min(block_m, M)
    if tm < M:
        tm = max(8, (tm // 8) * 8)      # sublane-aligned tiles when tiling
    grid_m = pl.cdiv(M, tm)

    kernel = functools.partial(_dropout_linear_kernel, float(p), bool(training))

    # Resident W + bias + double-buffered x/out tiles.
    vmem_bytes = 4 * (H * H + H + 2 * 2 * tm * H)
    compiler_kwargs = dict(dimension_semantics=("parallel",))
    if vmem_bytes > 32 * 1024 * 1024:
        compiler_kwargs["vmem_limit_bytes"] = min(
            vmem_bytes + (8 << 20), 64 * 1024 * 1024)

    out2d = pl.pallas_call(
        kernel,
        out_shape=jax.ShapeDtypeStruct((M, H), x.dtype),
        grid_spec=pltpu.PrefetchScalarGridSpec(
            num_scalar_prefetch=1,
            grid=(grid_m,),
            in_specs=[
                pl.BlockSpec((tm, H), lambda i, seed: (i, 0)),   # x tile
                pl.BlockSpec((H, H), lambda i, seed: (0, 0)),    # W resident
                pl.BlockSpec((1, H), lambda i, seed: (0, 0)),    # bias resident
            ],
            out_specs=pl.BlockSpec((tm, H), lambda i, seed: (i, 0)),
        ),
        compiler_params=pltpu.CompilerParams(**compiler_kwargs),
    )(seed_arr, x2d, w, b2d)

    return out2d.reshape(B, S, H)


if __name__ == "__main__":
    B, S, H = 2, 8, 32

    key = jax.random.PRNGKey(0)
    kx, kw, kb = jax.random.split(key, 3)
    x = jax.random.normal(kx, (B, S, H), dtype=jnp.float32)
    # Deterministic "Linear(H, H)" parameter init (Kaiming-uniform-like bound).
    bound = 1.0 / (H ** 0.5)
    w = jax.random.uniform(kw, (H, H), minval=-bound, maxval=bound, dtype=jnp.float32)
    b = jax.random.uniform(kb, (H,), minval=-bound, maxval=bound, dtype=jnp.float32)

    ref = (x.reshape(-1, H) @ w + b[None, :]).reshape(B, S, H)

    # Case 1: default p=0.0 (dropout is identity) — compare vs JAX reference.
    y0 = jax.block_until_ready(dropout_layer_forward(x, w, b, seed=0, p=0.0, training=True))
    assert jnp.allclose(y0, ref, atol=1e-5, rtol=1e-5), "p=0.0 mismatch vs reference"

    # Case 2: eval mode — dropout is identity regardless of p.
    y_eval = jax.block_until_ready(dropout_layer_forward(x, w, b, seed=7, p=0.5, training=False))
    assert jnp.allclose(y_eval, ref, atol=1e-5, rtol=1e-5), "eval-mode mismatch vs reference"

    # Case 3: p=0.25 training — every output element is 0 or ref/(1-p).
    p = 0.25
    y1 = jax.block_until_ready(dropout_layer_forward(x, w, b, seed=1234, p=p, training=True))
    dropped = jnp.isclose(y1, 0.0, atol=1e-6)
    scaled_ok = jnp.isclose(y1, ref / (1.0 - p), atol=1e-5, rtol=1e-5)
    assert bool(jnp.all(dropped | scaled_ok)), "dropout outputs must be 0 or scaled"

    print("KERNEL_OK")
</pallas_src>

<mosaic_0001>
module attributes {stable_mosaic.version = 11 : i64} {
  func.func @_dropout_linear_kernel(%arg0: i32, %arg1: memref<1xi32, #tpu.memory_space<smem>>, %arg2: memref<16x32xf32, #tpu.memory_space<vmem>>, %arg3: memref<32x32xf32, #tpu.memory_space<vmem>>, %arg4: memref<1x32xf32, #tpu.memory_space<vmem>>, %arg5: memref<16x32xf32, #tpu.memory_space<vmem>>) attributes {dimension_semantics = [#tpu.dimension_semantics<parallel>], iteration_bounds = array<i64: 1>, scalar_prefetch = 1 : i64, scratch_operands = 0 : i64, tpu.core_type = #tpu.core_type<tc>, window_params = [{transform_indices = @transform_0, window_bounds = array<i64: 16, 32>}, {pipeline_mode = #tpu.pipeline_mode<synchronous>, transform_indices = @transform_1, window_bounds = array<i64: 32, 32>}, {pipeline_mode = #tpu.pipeline_mode<synchronous>, transform_indices = @transform_2, window_bounds = array<i64: 1, 32>}, {transform_indices = @transform_3, window_bounds = array<i64: 16, 32>}]} {
    %c0 = arith.constant 0 : index
    %c0_0 = arith.constant 0 : index
    %0 = vector.load %arg2[%c0, %c0_0] : memref<16x32xf32, #tpu.memory_space<vmem>>, vector<16x32xf32>
    %c0_1 = arith.constant 0 : index
    %c0_2 = arith.constant 0 : index
    %1 = vector.load %arg3[%c0_1, %c0_2] : memref<32x32xf32, #tpu.memory_space<vmem>>, vector<32x32xf32>
    %cst = arith.constant dense<0.000000e+00> : vector<16x32xf32>
    %2 = tpu.matmul %0, %1, %cst {dimension_numbers = #tpu.dot_dimension_numbers<[1], [0], [0], [1], [0, 0, 1, 1], [], []>} : vector<16x32xf32>, vector<32x32xf32>, vector<16x32xf32> -> vector<16x32xf32>
    %c0_3 = arith.constant 0 : index
    %c0_4 = arith.constant 0 : index
    %3 = vector.load %arg4[%c0_3, %c0_4] : memref<1x32xf32, #tpu.memory_space<vmem>>, vector<1x32xf32>
    %4 = vector.broadcast %3 : vector<1x32xf32> to vector<16x32xf32>
    %5 = arith.addf %2, %4 : vector<16x32xf32>
    %c0_5 = arith.constant 0 : index
    %c0_6 = arith.constant 0 : index
    %6 = vector.load %arg5[%c0_5, %c0_6] : memref<16x32xf32, #tpu.memory_space<vmem>>, vector<16x32xf32>
    tpu.vector_store %arg5[%c0_5, %c0_6], %5 {strides = array<i32>} : memref<16x32xf32, #tpu.memory_space<vmem>>, vector<16x32xf32>,
    return
  }
  func.func @transform_0(%arg0: i32, %arg1: memref<1xi32, #tpu.memory_space<smem>>) -> (i32, i32) {
    %c0_i32 = arith.constant 0 : i32
    %c0_i32_0 = arith.constant 0 : i32
    return %arg0, %c0_i32 : i32, i32
  }
  func.func @transform_1(%arg0: i32, %arg1: memref<1xi32, #tpu.memory_space<smem>>) -> (i32, i32) {
    %c0_i32 = arith.constant 0 : i32
    %c0_i32_0 = arith.constant 0 : i32
    %c0_i32_1 = arith.constant 0 : i32
    return %c0_i32, %c0_i32_0 : i32, i32
  }
  func.func @transform_2(%arg0: i32, %arg1: memref<1xi32, #tpu.memory_space<smem>>) -> (i32, i32) {
    %c0_i32 = arith.constant 0 : i32
    %c0_i32_0 = arith.constant 0 : i32
    %c0_i32_1 = arith.constant 0 : i32
    return %c0_i32, %c0_i32_0 : i32, i32
  }
  func.func @transform_3(%arg0: i32, %arg1: memref<1xi32, #tpu.memory_space<smem>>) -> (i32, i32) {
    %c0_i32 = arith.constant 0 : i32
    %c0_i32_0 = arith.constant 0 : i32
    return %arg0, %c0_i32 : i32, i32
  }
}

</mosaic_0001>

<bundles_post_ra>
// kernel: tpu_custom_call.1
= control target key start
LH: loop header
LB: loop body
LE: loop exit
PB: predicated region body
PF: predicated region fallthrough
CT: control target
= control target key end

     0   :  { %10 = vsyncpa [#allocation5], 0  ;;  %s347_s0 = inlined_call_operand.<no memory space> [shape: s32[1], index: 0, kind: input, shape index: {}]   ;;  %s348_s1 = inlined_call_operand.hbm [shape: f32[16,32], index: 1, kind: input, shape index: {}]   ;;  %s349_s2 = inlined_call_operand.hbm [shape: f32[32,32], index: 2, kind: input, shape index: {}]   ;;  %s350_s3 = inlined_call_operand.vmem [shape: f32[1,32], index: 3, kind: input, shape index: {}]   ;;  %s351_s4 = inlined_call_operand.hbm [shape: f32[16,32], index: 4, kind: output, shape index: {}]  }
   0x1   :  { %11 = vsyncpa [#allocation8], 0 }
   0x2   :  { %12 = vsyncpa [#allocation6], 0  ;;  %s265_s15 = smov [#allocation4]   ;;  %s193_s18 = scalar_lea.hbm %s348_s1, 256 }
   0x3   :  { %s18_s16 = sshll.u32 %s265_s15, 4  ;;  %p194_p0 = scmp.ne.s32.totalorder %s348_s1, %s193_s18  ;;  %s19_s16 = int_to_ptr.vmem [resolvable:$true] %s18_s16 }
   0x4   :  { %p197_p1 = scmp.lt.u32.totalorder %s193_s18, %s348_s1 }
   0x6   :  { %p199_p2 = pnand %p197_p1, %p194_p0 }
   0x8   :  { %202 = shalt.err (!%p199_p2)
}
   0x9   :  { %s203_s23 = scalar_lea.vmem %s19_s16, 256  ;;  %p208_p4 = scmp.lt.s32.totalorder %s19_s16, %s19_s16 }
   0xa   :  { %p204_p3 = scmp.ne.s32.totalorder %s19_s16, %s203_s23  ;;  %p209_p5 = scmp.lt.s32.totalorder %s203_s23, %s203_s23 }
   0xc   :  { %p210_p6 = por %p209_p5, %p208_p4 }
   0xe   :  { %p211_p7 = pnand %p210_p6, %p204_p3 }
  0x10   :  { %214 = shalt.err (!%p211_p7)
}
  0x11   :  { %s266_s24 = smov 128   ;;  %s267_s25 = smov 8  }
  0x12   :  { %24 = dma.hbm_to_vmem [thread:$0]  %s348_s1, 256, %s19_s16, [#allocation5], %s266_s24, %s266_s24, %s267_s25  }
  0x13   :  { %s268_s28 = smov [#allocation7]   ;;  %s215_s6 = scalar_lea.hbm %s349_s2, 512 }
  0x14   :  { %s30_s29 = sshll.u32 %s268_s28, 4  ;;  %p216_p8 = scmp.ne.s32.totalorder %s349_s2, %s215_s6  ;;  %s31_s29 = int_to_ptr.vmem [resolvable:$true] %s30_s29 }
  0x15   :  { %p219_p9 = scmp.lt.u32.totalorder %s215_s6, %s349_s2 }
  0x17   :  { %p221_p10 = pnand %p219_p9, %p216_p8 }
  0x19   :  { %224 = shalt.err (!%p221_p10)
}
  0x1a   :  { %s225_s11 = scalar_lea.vmem %s31_s29, 512  ;;  %p230_p12 = scmp.lt.s32.totalorder %s31_s29, %s31_s29 }
  0x1b   :  { %p226_p11 = scmp.ne.s32.totalorder %s31_s29, %s225_s11  ;;  %p231_p13 = scmp.lt.s32.totalorder %s225_s11, %s225_s11 }
  0x1d   :  { %p232_p0 = por %p231_p13, %p230_p12 }
  0x1f   :  { %p233_p1 = pnand %p232_p0, %p226_p11 }
  0x21   :  { %236 = shalt.err (!%p233_p1)
}
  0x22   :  { %36 = dma.hbm_to_vmem [thread:$0]  %s349_s2, 512, %s31_s29, [#allocation8], %s266_s24, %s266_s24, %s267_s25  }
  0x23   :  { %259 = dma.done.wait [#allocation5], 256  }
  0x24   :  { %260 = vsyncadd [#allocation5], 4294967040 }
  0x25   :  { %261 = dma.done.wait [#allocation8], 512  }
  0x26   :  { %262 = vsyncadd [#allocation8], 4294966784  ;;  %vm58_vm0 = vcmask 261120   ;;  %v47_v0 = vld [vmem:[#allocation7] sm:$0xff]  ;;  %v48_v1 = vld [vmem:[#allocation7 + $0x8] sm:$0xff]  ;;  %s269_s14 = smov [#allocation9]  }
  0x27   :  { %v49_v2 = vld [vmem:[#allocation7 + $0x10] sm:$0xff]  ;;  %v180_v3 = vpack.c.bf16 %v48_v1, %v47_v0  ;;  %v50_v4 = vld [vmem:[#allocation7 + $0x18] sm:$0xff]  ;;  %s147_s15 = sshll.u32 %s269_s14, 4  ;;  %s148_s15 = int_to_ptr.vmem [resolvable:$true] %s147_s15 }
  0x28   :  { %v45_v5 = vld [vmem:[#allocation4] sm:$0xff]  ;;  %v184_v6 = vpack.c.bf16 %v50_v4, %v49_v2  ;;  %v46_v7 = vld [vmem:[#allocation4 + $0x8] sm:$0xff]  ;;  %s237_s16 = scalar_lea.vmem %s148_s15, 256  ;;  %p242_p3 = scmp.lt.s32.totalorder %s148_s15, %s148_s15 }
  0x29   :  { %177 = vmatprep.mubr.msk.f32.mxu0 %vm58_vm0, %v45_v5  ;;  %181 = vmatprep.subr.bf16.mxu0 %v180_v3  ;;  %v160_v8 = vld [vmem:[%s350_s3] ss:$0 sm:$0xff]  ;;  %p238_p2 = scmp.ne.s32.totalorder %s148_s15, %s237_s16  ;;  %p243_p4 = scmp.lt.s32.totalorder %s237_s16, %s237_s16 }
  0x2a   :  { %183 = vmatpush3.bf16.msra.mxu0 %v180_v3 }
  0x2b   :  { %185 = vmatprep.subr.bf16.mxu0 %v184_v6  ;;  %p244_p5 = por %p243_p4, %p242_p3 }
  0x2d   :  { %p245_p6 = pnand %p244_p5, %p238_p2 }
  0x2e   :  { %187 = vmatpush3.bf16.msra.mxu0 %v184_v6 }
  0x31   :  { %178 = vmatmul.mubr.msk.f32.vlgmr.msra.gmra.mrb[0].mxu0 %vm58_vm0, %v46_v7 }
 0x104   :  { %v179_v9 = vpop.f32.mrb[0].mxu0 }
 0x105   :  { %v137_v10 = vadd.f32 %v179_v9, %v160_v8  ;;  %v131_v11 = vpop.f32.mrb[1].mxu0 }
 0x106   :  { %v132_v12 = vadd.f32 %v160_v8, %v131_v11 }
 0x107   :  { %141 = vst.msk [vmem:[#allocation9 + $0x8] sm:$0xff] %vm58_vm0, %v137_v10 }
 0x108   :  { %140 = vst.msk [vmem:[#allocation9] sm:$0xff] %vm58_vm0, %v132_v12 }
 0x109   :  { %248 = shalt.err (!%p245_p6)
}
 0x10a   :  { %s249_s0 = scalar_lea.hbm %s351_s4, 256 }
 0x10b   :  { %p250_p7 = scmp.ne.s32.totalorder %s351_s4, %s249_s0  ;;  %p253_p8 = scmp.lt.u32.totalorder %s249_s0, %s351_s4 }
 0x10d   :  { %p255_p9 = pnand %p253_p8, %p250_p7 }
 0x10f   :  { %258 = shalt.err (!%p255_p9)
}
 0x110   :  { %153 = dma.vmem_to_hbm [thread:$0]  %s148_s15, 256, %s351_s4, [#allocation6], %s266_s24, %s266_s24, %s267_s25  }
 0x111   :  { %263 = dma.done.wait [#allocation6], 256  }
 0x112   :  { %264 = vsyncadd [#allocation6], 4294967040 }
 0x113   :  { %157 = vsyncpa [#allocation5], 1 }
 0x114   :  { %158 = vsyncpa [#allocation8], 1 }
 0x115   :  { %159 = vsyncpa [#allocation6], 1 }

</bundles_post_ra>
